<compile_context>
chip_gen: v6e
topology: v6e:2x2x1
jax: 0.10.0
libtpu: 0.0.40
codegen_flags: <defaults>
</compile_context>

<pallas_src>
import jax
import jax.numpy as jnp
from jax.experimental import pallas as pl
from jax.experimental.pallas import tpu as pltpu


def arm_kernel(x_ref, wt_ref, b_ref, o_ref):
    # x_ref : (B_blk, Cin, HW)  input slab, native dtype
    # wt_ref: (Cin, Cout)       1x1-conv weight, transposed and pre-scaled by 1/HW (f32)
    # b_ref : (1, Cout)         bias (f32)
    # o_ref : (B_blk, Cin, HW)  output slab, same dtype as input
    xf = x_ref[...].astype(jnp.float32)                 # upcast once; accumulate in f32

    # Global average pool: plain sum here, the 1/HW factor is folded into wt_ref.
    pooled = jnp.sum(xf, axis=2)                        # (B_blk, Cin) f32

    # 1x1 conv + bias on the pooled vectors (single MXU matmul for the whole block).
    logits = jnp.dot(pooled, wt_ref[...],
                     preferred_element_type=jnp.float32) + b_ref[...]   # (B_blk, Cout)
    attn = 1.0 / (1.0 + jnp.exp(-logits))               # sigmoid (exp on EUP slot)

    # Channel-wise re-weighting (Cout == Cin); cast back to the input dtype on store.
    o_ref[...] = (xf * attn[:, :, None]).astype(o_ref.dtype)


def attention_refinement(x_nchw, weight, bias):
    """x_nchw: (N, Cin, H, W); weight: (Cout, Cin, 1, 1); bias: (Cout,)."""
    N, Cin, H, W = x_nchw.shape
    Cout = weight.shape[0]
    assert Cout == Cin, "channel-wise multiply requires out_channels == in_channels"

    HW = H * W
    dtype = x_nchw.dtype
    dbytes = jnp.dtype(dtype).itemsize

    # Free view: NCHW is contiguous, so (N, Cin, HW) is just a reshape. No pad, no cast.
    x3 = x_nchw.reshape(N, Cin, HW)

    # Fold 1/HW into the transposed weight (conv is linear, so this is exact):
    #   logits[b, o] = sum_c (sum_hw x[b,c]) * W[o,c] / HW + bias[o]
    wt = (weight.reshape(Cout, Cin).astype(jnp.float32) * (1.0 / HW)).T    # (Cin, Cout)
    b2 = bias.reshape(1, Cout).astype(jnp.float32)

    # ---- generation-aware VMEM budget ------------------------------------------------
    try:
        vmem_cap = int(pltpu.get_tpu_info().vmem_capacity_bytes)
    except Exception:
        vmem_cap = 64 * 1024 * 1024
    vmem_limit = max(32 * 1024 * 1024,
                     min(vmem_cap - 16 * 1024 * 1024, 112 * 1024 * 1024))

    # ---- batch-block size: ~4 MiB slab per grid step, 2x(in)+2x(out) buffers in VMEM --
    bytes_per_sample = Cin * HW * dbytes
    target_slab = 4 * 1024 * 1024
    max_from_vmem = max(1, (vmem_limit * 3 // 4) // (4 * max(bytes_per_sample, 1)))
    b_blk = max(1, min(N, target_slab // max(bytes_per_sample, 1), max_from_vmem))
    # Keep >= 2 grid steps when possible so both v7x TensorCores contribute bandwidth.
    if N >= 2 and (N // b_blk) < 2:
        b_blk = max(1, N // 2)
    while N % b_blk != 0:          # clamp to a divisor of N (no partial blocks)
        b_blk -= 1
    grid = (N // b_blk,)

    cost = pl.CostEstimate(
        flops=int(2 * N * Cin * Cout + 3 * N * Cin * HW),
        transcendentals=int(N * Cout),
        bytes_accessed=int(2 * N * Cin * HW * dbytes + Cin * Cout * 4 + Cout * 4),
    )

    out = pl.pallas_call(
        arm_kernel,
        out_shape=jax.ShapeDtypeStruct((N, Cin, HW), dtype),
        grid=grid,
        in_specs=[
            pl.BlockSpec((b_blk, Cin, HW), lambda n: (n, 0, 0)),   # streaming input slab
            pl.BlockSpec((Cin, Cout), lambda n: (0, 0)),           # resident weight
            pl.BlockSpec((1, Cout), lambda n: (0, 0)),             # resident bias
        ],
        out_specs=pl.BlockSpec((b_blk, Cin, HW), lambda n: (n, 0, 0)),
        compiler_params=pltpu.CompilerParams(
            dimension_semantics=("parallel",),     # batch-blocks shard across v7x's 2 TCs
            vmem_limit_bytes=vmem_limit,
        ),
        cost_estimate=cost,
    )(x3, wt, b2)

    return out.reshape(N, Cin, H, W)


def _reference(x, weight, bias):
    """Pure-JAX reference matching the PyTorch forward (dtype-preserving)."""
    xf = x.astype(jnp.float32)
    pooled = jnp.mean(xf, axis=(2, 3), keepdims=True)                      # (N,Cin,1,1)
    w = weight.reshape(weight.shape[0], weight.shape[1]).astype(jnp.float32)
    logits = jnp.einsum("oc,ncij->noij", w, pooled) + bias.reshape(1, -1, 1, 1).astype(jnp.float32)
    attn = jax.nn.sigmoid(logits)
    return (xf * attn).astype(x.dtype)


if __name__ == "__main__":
    key = jax.random.PRNGKey(0)
    kx, kw, kb = jax.random.split(key, 3)

    N, C, H, W = 2, 4, 16, 16          # in_channels == out_channels == 4
    x = jax.random.normal(kx, (N, C, H, W), dtype=jnp.float32)
    weight = jax.random.normal(kw, (C, C, 1, 1), dtype=jnp.float32) * (1.0 / C) ** 0.5
    bias = jax.random.normal(kb, (C,), dtype=jnp.float32) * 0.1

    # f32 path
    out = jax.block_until_ready(attention_refinement(x, weight, bias))
    ref = _reference(x, weight, bias)
    assert out.shape == (N, C, H, W) and out.dtype == x.dtype
    assert jnp.allclose(out, ref, atol=1e-4, rtol=1e-4)

    # dtype-preserving bf16 path (native bf16 streaming, f32 accumulation in-kernel)
    x16 = x.astype(jnp.bfloat16)
    out16 = jax.block_until_ready(attention_refinement(x16, weight, bias))
    ref16 = _reference(x16, weight, bias)
    assert out16.dtype == jnp.bfloat16
    assert jnp.allclose(out16.astype(jnp.float32), ref16.astype(jnp.float32),
                        atol=3e-2, rtol=3e-2)

    print("KERNEL_OK")
</pallas_src>

<mosaic_0001>
module attributes {stable_mosaic.version = 11 : i64} {
  func.func @arm_kernel(%arg0: i32, %arg1: memref<1x4x256xf32, #tpu.memory_space<vmem>>, %arg2: memref<4x4xf32, #tpu.memory_space<vmem>>, %arg3: memref<1x4xf32, #tpu.memory_space<vmem>>, %arg4: memref<1x4x256xf32, #tpu.memory_space<vmem>>) attributes {dimension_semantics = [#tpu.dimension_semantics<parallel>], iteration_bounds = array<i64: 2>, scalar_prefetch = 0 : i64, scratch_operands = 0 : i64, tpu.core_type = #tpu.core_type<tc>, window_params = [{transform_indices = @transform_0, window_bounds = array<i64: 1, 4, 256>}, {pipeline_mode = #tpu.pipeline_mode<synchronous>, transform_indices = @transform_1, window_bounds = array<i64: 4, 4>}, {pipeline_mode = #tpu.pipeline_mode<synchronous>, transform_indices = @transform_2, window_bounds = array<i64: 1, 4>}, {transform_indices = @transform_3, window_bounds = array<i64: 1, 4, 256>}]} {
    %c0 = arith.constant 0 : index
    %c0_0 = arith.constant 0 : index
    %c0_1 = arith.constant 0 : index
    %0 = vector.load %arg1[%c0, %c0_0, %c0_1] : memref<1x4x256xf32, #tpu.memory_space<vmem>>, vector<1x4x256xf32>
    %cst = arith.constant dense<0.000000e+00> : vector<1x4xf32>
    %1 = vector.multi_reduction <add>, %0, %cst [2] : vector<1x4x256xf32> to vector<1x4xf32>
    %c0_2 = arith.constant 0 : index
    %c0_3 = arith.constant 0 : index
    %2 = vector.load %arg2[%c0_2, %c0_3] : memref<4x4xf32, #tpu.memory_space<vmem>>, vector<4x4xf32>
    %cst_4 = arith.constant dense<0.000000e+00> : vector<1x4xf32>
    %3 = tpu.matmul %1, %2, %cst_4 {dimension_numbers = #tpu.dot_dimension_numbers<[1], [0], [0], [1], [0, 0, 1, 1], [], []>} : vector<1x4xf32>, vector<4x4xf32>, vector<1x4xf32> -> vector<1x4xf32>
    %c0_5 = arith.constant 0 : index
    %c0_6 = arith.constant 0 : index
    %4 = vector.load %arg3[%c0_5, %c0_6] : memref<1x4xf32, #tpu.memory_space<vmem>>, vector<1x4xf32>
    %5 = arith.addf %3, %4 : vector<1x4xf32>
    %cst_7 = arith.constant 0.000000e+00 : f32
    %6 = vector.broadcast %cst_7 : f32 to vector<1x4xf32>
    %7 = arith.subf %6, %5 : vector<1x4xf32>
    %8 = math.exp %7 : vector<1x4xf32>
    %cst_8 = arith.constant 1.000000e+00 : f32
    %9 = vector.broadcast %cst_8 : f32 to vector<1x4xf32>
    %10 = arith.addf %9, %8 : vector<1x4xf32>
    %cst_9 = arith.constant 1.000000e+00 : f32
    %11 = vector.broadcast %cst_9 : f32 to vector<1x4xf32>
    %12 = arith.divf %11, %10 : vector<1x4xf32>
    %13 = vector.shape_cast %12 : vector<1x4xf32> to vector<1x4x1xf32>
    %14 = vector.broadcast %13 : vector<1x4x1xf32> to vector<1x4x256xf32>
    %15 = arith.mulf %0, %14 : vector<1x4x256xf32>
    %c0_10 = arith.constant 0 : index
    %c0_11 = arith.constant 0 : index
    %c0_12 = arith.constant 0 : index
    %16 = vector.load %arg4[%c0_10, %c0_11, %c0_12] : memref<1x4x256xf32, #tpu.memory_space<vmem>>, vector<1x4x256xf32>
    tpu.vector_store %arg4[%c0_10, %c0_11, %c0_12], %15 {strides = array<i32>} : memref<1x4x256xf32, #tpu.memory_space<vmem>>, vector<1x4x256xf32>,
    return
  }
  func.func @transform_0(%arg0: i32) -> (i32, i32, i32) {
    %c0_i32 = arith.constant 0 : i32
    %c0_i32_0 = arith.constant 0 : i32
    %c0_i32_1 = arith.constant 0 : i32
    return %arg0, %c0_i32, %c0_i32_0 : i32, i32, i32
  }
  func.func @transform_1(%arg0: i32) -> (i32, i32) {
    %c0_i32 = arith.constant 0 : i32
    %c0_i32_0 = arith.constant 0 : i32
    %c0_i32_1 = arith.constant 0 : i32
    return %c0_i32, %c0_i32_0 : i32, i32
  }
  func.func @transform_2(%arg0: i32) -> (i32, i32) {
    %c0_i32 = arith.constant 0 : i32
    %c0_i32_0 = arith.constant 0 : i32
    %c0_i32_1 = arith.constant 0 : i32
    return %c0_i32, %c0_i32_0 : i32, i32
  }
  func.func @transform_3(%arg0: i32) -> (i32, i32, i32) {
    %c0_i32 = arith.constant 0 : i32
    %c0_i32_0 = arith.constant 0 : i32
    %c0_i32_1 = arith.constant 0 : i32
    return %arg0, %c0_i32, %c0_i32_0 : i32, i32, i32
  }
}

</mosaic_0001>

<bundles_post_ra>
// kernel: tpu_custom_call.1
= control target key start
LH: loop header
LB: loop body
LE: loop exit
PB: predicated region body
PF: predicated region fallthrough
CT: control target
= control target key end

     0   :  { %8 = vsyncpa [#allocation3], 0  ;;  %s829_s0 = inlined_call_operand.hbm [shape: f32[2,4,256], index: 0, kind: input, shape index: {}]   ;;  %s830_s1 = inlined_call_operand.hbm [shape: f32[4,4], index: 1, kind: input, shape index: {}]   ;;  %s831_s2 = inlined_call_operand.vmem [shape: f32[1,4], index: 2, kind: input, shape index: {}]   ;;  %s832_s3 = inlined_call_operand.hbm [shape: f32[2,4,256], index: 3, kind: output, shape index: {}]  }
   0x1   :  { %10 = vsyncpa [#allocation3 + $0x1], 0 }
   0x2   :  { %11 = vsyncpa [#allocation6], 0 }
   0x3   :  { %12 = vsyncpa [#allocation4], 0 }
   0x4   :  { %14 = vsyncpa [#allocation4 + $0x1], 0  ;;  %s656_s12 = smov 0   ;;  %s658_s13 = smov 0  }
   0x5   :  { %s660_s14 = smov 0   ;;  %s662_s15 = smov 0  }
   0x6 LB: > { %s677_s16 = sadd.s32 4294967295, %s628_s15   ;;  %s414_s17 = sadd.s32 4294967294, %s628_s15   ;;  %s628_s15 = sphi %s662_s15, %s855_s15   ;;  %s624_s14 = sphi %s660_s14, %s854_s14   ;;  %s620_s13 = sphi %s658_s13, %s853_s13   ;;  %s616_s12 = sphi %s656_s12, %s852_s12  }
   0x7   : > { %p40_p0 = scmp.ne.s32.totalorder %s620_s13, %s616_s12  ;;  %p833_p1 = scmp.eq.s32.totalorder %s677_s16, 0 }
   0x8   : > { %p112_p3 = scmp.eq.s32.totalorder %s414_s17, 1  ;;  %p415_p5 = scmp.ge.s32.totalorder %s628_s15, 1 }
   0x9   : > { %p686_p4 = por %p833_p1, %p40_p0  ;;  %p119_p7 = scmp.lt.s32.totalorder %s628_s15, 3 }
   0xa   : > { %p691_p6 = por %p112_p3, %p40_p0  ;;  %s630_s21 = smov [#allocation5]  }
   0xb   : > { %s837_s18 = scalar_select %p686_p4, 1, 0 }
   0xc   : > { %s838_s19 = scalar_select %p691_p6, 1, 0 }
   0xd   : > { %p696_p8 = pnand %p415_p5, %p119_p7  ;;  %s132_s22 = sshll.u32 %s630_s21, 4  ;;  %s133_s22 = int_to_ptr.vmem [resolvable:$true] %s132_s22 }
   0xe   : > { %s704_s23 = sadd.s32 1, %s628_s15   ;;  %s27_s27 = sadd.s32 1, %s624_s14 }
   0xf   : > { %s839_s20 = scalar_select %p696_p8, 1, 0 }
  0x10   : > { %p449_p10 = pneg %p696_p8  ;;  %s24_s25 = ssub.s32 %s628_s15, %s704_s23 }
  0x11   : > { %p714_p12 = scmp.eq.s32.totalorder %s24_s25, 0  ;;  %p34_p13 = scmp.ne.s32.totalorder %s624_s14, %s620_s13 }
  0x12   : > { %p708_p11 = pnand %p449_p10, %p833_p1  ;;  %s517_s28 = scalar_lea.vmem %s133_s22, 64 }
  0x13   : > { %p518_p3 = scmp.ne.s32.totalorder %s133_s22, %s517_s28  ;;  %p525_p9 = scmp.lt.s32.totalorder %s133_s22, %s133_s22 }
  0x14   : > { %p508_p0 = pneg %p708_p11  ;;  %p526_p2 = scmp.lt.s32.totalorder %s517_s28, %s517_s28 }
  0x16   : > { %p520_p5 = pnand %p518_p3, %p508_p0  ;;  %p527_p10 = por %p526_p2, %p525_p9 }
  0x18   : > { %p521_p7 = pneg %p520_p5 }
  0x1a   : > { %p528_p1 = pnand %p527_p10, %p521_p7 }
  0x1c   : > { %531 = shalt.err (!%p528_p1)
}
  0x1d   : > { %452 = dma.hbm_to_vmem [thread:$0]  (!%p708_p11), %s830_s1, 64, %s133_s22, [#allocation6]  }
  0x1e   : > { %s731_s4 = scalar_select %p714_p12, %s624_s14, %s27_s27  }
  0x1f   : > { %p35_p1 = scmp.eq.s32.totalorder %s628_s15, 0  ;;  %p842_p2 = scmp.eq.s32.totalorder %s677_s16, 1 }
  0x20   : > { %p462_p0 = scmp.lt.s32.totalorder %s628_s15, 2  ;;  %s146_s6 = sand.u32 1, %s624_s14  }
  0x21   : > { %p739_p9 = por %p842_p2, %p34_p13  ;;  %p36_p3 = por %p35_p1, %p34_p13 }
  0x22   : > { %s418_s7 = sshll.u32 %s146_s6, 3  ;;  %s432_s8 = sshll.u32 %s628_s15, 7 }
  0x23   : > { %s843_s5 = scalar_select %p739_p9, 1, 0 }
  0x24   : > { %s752_s11 = scalar_lea.hbm %s829_s0, %s432_s8  ;;  %s150_s17 = scalar_lea.vmem [#allocation2], %s418_s7 }
  0x25   : > { %s158_s21 = sshll.u32 %s150_s17, 4  ;;  %p754_p11 = pnand %p462_p0, %p36_p3  ;;  %s159_s21 = int_to_ptr.vmem [resolvable:$true] %s158_s21 }
  0x26   : > { %s147_s24 = scalar_lea.sflag [#allocation3], %s146_s6  ;;  %s532_s25 = scalar_lea.hbm %s752_s11, 128 }
  0x27   : > { %p533_p12 = scmp.ne.s32.totalorder %s752_s11, %s532_s25  ;;  %p534_p13 = pneg %p754_p11 }
  0x28   : > { %s537_s28 = scalar_lea.hbm %s829_s0, 256  ;;  %p538_p10 = scmp.lt.s32.totalorder %s752_s11, %s829_s0 }
  0x29   : > { %p535_p5 = pnand %p534_p13, %p533_p12  ;;  %p539_p1 = scmp.lt.s32.totalorder %s537_s28, %s532_s25 }
  0x2b   : > { %p536_p7 = pneg %p535_p5  ;;  %p540_p2 = por %p539_p1, %p538_p10 }
  0x2d   : > { %p541_p0 = pnand %p540_p2, %p536_p7 }
  0x2f   : > { %544 = shalt.err (!%p541_p0)
}
  0x30   : > { %s545_s7 = scalar_lea.vmem %s159_s21, 128  ;;  %s631_s6 = smov [#allocation2]  }
  0x31   : > { %p546_p3 = scmp.ne.s32.totalorder %s159_s21, %s545_s7  ;;  %s550_s8 = sshll.u32 %s631_s6, 4  ;;  %s551_s8 = int_to_ptr.vmem [resolvable:$false] %s550_s8 }
  0x32   : > { %s552_s9 = scalar_lea.vmem %s551_s8, 256  ;;  %p553_p12 = scmp.lt.s32.totalorder %s159_s21, %s551_s8 }
  0x33   : > { %p548_p6 = pnand %p546_p3, %p534_p13  ;;  %p554_p5 = scmp.lt.s32.totalorder %s552_s9, %s545_s7 }
  0x35   : > { %p549_p9 = pneg %p548_p6  ;;  %p555_p4 = por %p554_p5, %p553_p12 }
  0x37   : > { %p556_p8 = pnand %p555_p4, %p549_p9 }
  0x39   : > { %559 = shalt.err (!%p556_p8)
}
  0x3a   : > { %456 = dma.hbm_to_vmem [thread:$0]  (!%p754_p11), %s752_s11, 128, %s159_s21, %s147_s24  }
  0x3b   : > { %p845_p7 = scmp.ne.s32.totalorder %s839_s20, 0 }
  0x3c   : > { %s775_s10 = sand.u32 (!%p845_p7), 1, %s620_s13   ;;  %p846_p4 = scmp.ne.s32.totalorder (!%p845_p7), %s837_s18, 0 }
  0x3d   : > { %167 = sbr.rel (%p845_p7) target bundleno = 579 (0x243), region = 32  ;;  %s422_s17 = sshll.u32 (!%p845_p7), %s775_s10, 3 }
  0x3e   : > { %s170_s25 = scalar_lea.sflag (!%p845_p7), [#allocation3], %s775_s10  ;;  %s173_s26 = scalar_lea.vmem (!%p845_p7), [#allocation2], %s422_s17 }
  0x42   : > { %603 = dma.done.wait (%p846_p4), %s170_s25, 128  }
  0x43   : > { %605 = vsyncadd (%p846_p4), %s170_s25, 4294967168  ;;  %p847_p6 = scmp.eq.s32.totalorder %s677_s16, 0 }
  0x45   : > { %607 = dma.done.wait (%p847_p6), [#allocation6], 64   ;;  %p848_p8 = pmov %p847_p6 }
  0x46   : > { %vm204_vm0 = vcmask 1043456   ;;  %v200_v0 = vld [vmem:[%s173_s26] sm:$0xff]  ;;  %v632_v5 = vmov 0.0   ;;  %v210_v6 = vld [vmem:[#allocation5] sm:$0xf]  ;;  %vm633_vm1 = vmmov 0   ;;  %v213_v7 = vlaneseq }
  0x47   : > { %609 = vsyncadd (%p848_p8), [#allocation6], 4294967232  ;;  %v202_v1 = vcombine.high %v200_v0, %v200_v0  ;;  %v205_v2 = vsel %vm204_vm0, %v200_v0, 0.0  ;;  %436 = vmatprep.subr.mxu0 %v632_v5  ;;  %438 = vmatprep.mubr.msk.f32.mxu0 %vm633_vm1, %v632_v5  ;;  %vm219_vm2 = vcmask 31744   ;;  %v211_v13 = vld [vmem:[%s831_s2] sm:$0x1] }
  0x48   : > { %437 = vmatpush3.msk.msra.mxu0 %vm204_vm0, %v210_v6  ;;  %v214_v8 = vand.u32 127, %v213_v7  ;;  %v216_v9 = vshrl.u32 %v213_v7, 7  ;;  %v634_v24 = vmov 839922192   ;;  %s433_s11 = sshll.u32 %s677_s16, 7  ;;  %s199_s21 = scalar_lea.vmem [#allocation7], %s422_s17 }
  0x49   : > { %v206_v3 = vsel %vm204_vm0, %v202_v1, 0.0  ;;  %v310_v25 = vunpack.c.l.s4 %v634_v24  ;;  %s334_s22 = sshll.u32 %s199_s21, 4  ;;  %s332_s28 = scalar_lea.hbm %s832_s3, %s433_s11  ;;  %s335_s22 = int_to_ptr.vmem [resolvable:$true] %s334_s22 }
  0x4a   : > { %v207_v4 = vadd.f32 %v206_v3, %v205_v2  ;;  %v217_v10 = vsub.s32 %v214_v8, %v216_v9  ;;  %v303_v21 = vsub.s32 0, %v216_v9  ;;  %s320_s29 = scalar_lea.sflag [#allocation4], %s775_s10  ;;  %s560_s30 = scalar_lea.vmem %s335_s22, 128 }
  0x4b   : > { %v311_v26 = vunpack.c.0.s8 %v310_v25  ;;  %p561_p9 = scmp.ne.s32.totalorder %s335_s22, %s560_s30  ;;  %p849_p11 = scmp.ne.s32.totalorder %s843_s5, 0 }
  0x4c   : > { %208 = vadd.xlane.f32.xlu0 %v207_v4  ;;  %s635_s7 = smov [#allocation7]  }
  0x4d   : > { %v314_v27 = vsub.s32 %v311_v26, %v216_v9  ;;  %p562_p13 = pnand %p561_p9, %p849_p11  ;;  %s564_s6 = sshll.u32 %s635_s7, 4  ;;  %s565_s6 = int_to_ptr.vmem [resolvable:$false] %s564_s6 }
  0x4e   : > { %s566_s16 = scalar_lea.vmem %s565_s6, 256  ;;  %p567_p1 = scmp.lt.s32.totalorder %s335_s22, %s565_s6 }
  0x4f   : > { %p563_p10 = pneg %p562_p13  ;;  %p568_p2 = scmp.lt.s32.totalorder %s566_s16, %s560_s30 }
  0x51   : > { %p569_p0 = por %p568_p2, %p567_p1 }
  0x53   : > { %p570_p3 = pnand %p569_p0, %p563_p10 }
  0xd5   : > { %v209_v11 = vpop.xlane.xlu0 %208 }
  0xd6   : > { %v218_v12 = vrot.slane %v209_v11, %v217_v10 }
  0xd8   : > { %439 = vmatmul.mubr.msk.f32.vlgmr.msra.gmra.mxu0 %vm219_vm2, %v218_v12 }
 0x198   : > { %v291_v14 = vpop.f32.mrf.mxu0 }
 0x199   : > { %v292_v15 = vadd.f32 %v291_v14, %v211_v13 }
 0x19a   : > { %v440_v16 = vpop.f32.mrf.mxu0 }
 0x19b   : > { %v295_v17 = vsub.f32 0.0, %v292_v15 }
 0x19d   : > { %v296_v18 = vmul.f32 1.442695, %v295_v17 }
 0x19f   : > { %502 = vpow2.f32 %v296_v18 }
 0x1ac   : > { %v503_v19 = vpop.eup %502 }
 0x1ad   : > { %v298_v20 = vadd.f32 1.0, %v503_v19 }
 0x1af   : > { %504 = vrcp.f32 %v298_v20 }
 0x1bc   : > { %v505_v22 = vpop.eup %504 }
 0x1bd   : > { %v304_v23 = vrot.slane %v505_v22, %v303_v21 }
 0x1bf   : > { %306 = vbcast.lane.b32.xlu0 %v304_v23, 256 }
 0x231   : > { %v307_v28 = vpop.permute.xlu0 %306 }
 0x232   : > { %v315_v29 = vrot.slane %v307_v28, %v314_v27 }
 0x234   : > { %v317_v30 = vmul.f32 %v315_v29, %v200_v0 }
 0x236   : > { %318 = vst [vmem:[%s199_s21] sm:$0xff] %v317_v30 }
 0x237   : > { %573 = shalt.err (!%p570_p3)
}
 0x238   : > { %s574_s8 = scalar_lea.hbm %s332_s28, 128  ;;  %s578_s17 = scalar_lea.hbm %s832_s3, 256 }
 0x239   : > { %p575_p12 = scmp.ne.s32.totalorder %s332_s28, %s574_s8  ;;  %p579_p4 = scmp.lt.s32.totalorder %s332_s28, %s832_s3 }
 0x23a   : > { %p580_p6 = scmp.lt.s32.totalorder %s578_s17, %s574_s8 }
 0x23b   : > { %p576_p5 = pnand %p575_p12, %p849_p11 }
 0x23c   : > { %p581_p8 = por %p580_p6, %p579_p4 }
 0x23d   : > { %p577_p7 = pneg %p576_p5 }
 0x23f   : > { %p582_p9 = pnand %p581_p8, %p577_p7 }
 0x241   : > { %585 = shalt.err (!%p582_p9)
}
 0x242   : > { %447 = dma.vmem_to_hbm [thread:$0]  (%p849_p11), %s335_s22, 128, %s332_s28, %s320_s29  }
 0x243 PF: > { %s346_s18 = sand.u32 1, %s616_s12   ;;  %p850_p13 = scmp.ne.s32.totalorder %s838_s19, 0 }
 0x244   : > { %p851_p10 = scmp.ge.s32.totalorder %s628_s15, 2  ;;  %s347_s20 = scalar_lea.sflag [#allocation4], %s346_s18 }
 0x246   : > { %p458_p1 = pnand %p851_p10, %p850_p13 }
 0x248   : > { %p459_p2 = pneg %p458_p1 }
 0x24a   : > { %611 = dma.done.wait (%p459_p2), %s347_s20, 128  }
 0x24b   : > { %613 = vsyncadd (%p459_p2), %s347_s20, 4294967168  ;;  %p17_p0 = scmp.ge.s32.totalorder %s704_s23, 4   ;;  %s852_s12 = smov %s620_s13 }
 0x24c   : > { %s853_s13 = smov %s624_s14  ;;  %s854_s14 = smov %s731_s4 }
 0x24d   : > { %s855_s15 = smov %s704_s23  ;;  %19 = sbr.rel (!%p17_p0) target bundleno = 6 (0x6), region = 81 }
 0x252   :  { %352 = vsyncpa [#allocation3], 1 }
 0x253   :  { %354 = vsyncpa [#allocation3 + $0x1], 1 }
 0x254   :  { %355 = vsyncpa [#allocation6], 1 }
 0x255   :  { %356 = vsyncpa [#allocation4], 1 }
 0x256   :  { %358 = vsyncpa [#allocation4 + $0x1], 1 }

</bundles_post_ra>
